<compile_context>
chip_gen: v6e
topology: v6e:2x2x1
jax: 0.10.0
libtpu: 0.0.40
codegen_flags: <defaults>
</compile_context>

<pallas_src>
import functools

import jax
import jax.numpy as jnp
from jax.experimental import pallas as pl
from jax.experimental.pallas import tpu as pltpu

ALPHA = 0.25
GAMMA = 2.0  # exploited as an explicit square in the kernel

LANES = 128
SUBLANES = 8
MAX_TILE_ROWS = 1024   # (1024, 128) f32 tile = 512 KiB
NCORES_MAX = 2         # v7x megacore; harmless serial split on v5e/v6e


def _cdiv(a, b):
    return -(-a // b)


def _focal_loss_kernel(logits_ref, targets_ref, out_ref, *, n_valid,
                       tile_rows, tiles_real, steps_per_core, need_mask):
    c = pl.program_id(0)   # "parallel" core axis
    i = pl.program_id(1)   # "arbitrary" reduction axis

    # Output block is the accumulator (resident across the inner axis).
    @pl.when(i == 0)
    def _():
        out_ref[...] = jnp.zeros_like(out_ref)

    x = logits_ref[...].astype(jnp.float32)
    t = targets_ref[...].astype(jnp.float32)

    def _accumulate(apply_mask):
        # Single transcendental base: e = exp(-|x|).
        e = jnp.exp(-jnp.abs(x))
        # Stable binary_cross_entropy_with_logits:
        #   bce = max(x, 0) - x*t + log(1 + exp(-|x|))
        bce = jnp.maximum(x, 0.0) - x * t + jnp.log1p(e)
        # sigmoid(x) from the same e:  x>=0 -> 1/(1+e),  x<0 -> e/(1+e)
        # (pl.reciprocal(..., approx=True) is a further EUP lever at ~1e-3
        #  relative accuracy; kept exact here to preserve f32 accuracy.)
        inv = pl.reciprocal(1.0 + e, approx=False)
        probs = jnp.where(x >= 0.0, inv, e * inv)

        p_t = probs * t + (1.0 - probs) * (1.0 - t)
        alpha_t = ALPHA * t + (1.0 - ALPHA) * (1.0 - t)
        om = 1.0 - p_t
        focal = alpha_t * (om * om) * bce          # gamma == 2.0

        if apply_mask:
            # Mask elements whose global flat index >= n_valid (lane padding,
            # Pallas partial-block garbage rows, or clamped duplicate tiles).
            tile_idx = c * steps_per_core + i
            rr = jax.lax.broadcasted_iota(jnp.int32, focal.shape, 0)
            cc = jax.lax.broadcasted_iota(jnp.int32, focal.shape, 1)
            flat = (tile_idx * tile_rows + rr) * LANES + cc
            focal = jnp.where(flat < n_valid, focal, 0.0)

        out_ref[...] += focal                      # pure VPU adds

    if need_mask:
        tile_idx = c * steps_per_core + i
        last_real = tiles_real - 1

        @pl.when(tile_idx >= last_real)            # only tail tile(s) masked
        def _():
            _accumulate(True)

        @pl.when(tile_idx < last_real)             # mask-free steady state
        def _():
            _accumulate(False)
    else:
        _accumulate(False)


@jax.jit
def focal_loss(logits, targets):
    """Binary focal loss, reduction='mean' (matches FocalLoss.forward)."""
    n = logits.size
    if targets.size != n:
        raise ValueError("logits / targets size mismatch")
    if n == 0:
        return jnp.float32(0.0)

    x = logits.reshape(-1)
    t = targets.reshape(-1)
    if not jnp.issubdtype(t.dtype, jnp.floating):
        t = t.astype(jnp.float32)          # torch: targets.float()

    # Pad (only when misaligned) so the flat length is a multiple of 8*128;
    # the common aligned case is a metadata-only reshape (no HBM copy).
    chunk = SUBLANES * LANES
    n_pad = (-n) % chunk
    if n_pad:
        x = jnp.pad(x, (0, n_pad))
        t = jnp.pad(t, (0, n_pad))
    rows = (n + n_pad) // LANES
    x2 = x.reshape(rows, LANES)
    t2 = t.reshape(rows, LANES)

    tile_rows = min(MAX_TILE_ROWS, rows)           # rows is a multiple of 8
    tiles_real = _cdiv(rows, tile_rows)
    ncores = min(NCORES_MAX, tiles_real)
    steps = _cdiv(tiles_real, ncores)
    tiles_total = ncores * steps
    need_mask = (tiles_total * tile_rows * LANES) != n
    max_tile = tiles_real - 1

    if tiles_total == tiles_real:
        in_map = lambda c, i: (c * steps + i, 0)
    else:
        # Clamp duplicate tail tiles to a valid block; they are fully masked
        # out inside the kernel.
        in_map = lambda c, i: (jnp.minimum(c * steps + i, max_tile), 0)

    kernel = functools.partial(
        _focal_loss_kernel,
        n_valid=n,
        tile_rows=tile_rows,
        tiles_real=tiles_real,
        steps_per_core=steps,
        need_mask=need_mask,
    )

    partials = pl.pallas_call(
        kernel,
        out_shape=jax.ShapeDtypeStruct((ncores, tile_rows, LANES), jnp.float32),
        grid=(ncores, steps),
        in_specs=[
            pl.BlockSpec((tile_rows, LANES), in_map),
            pl.BlockSpec((tile_rows, LANES), in_map),
        ],
        out_specs=pl.BlockSpec((None, tile_rows, LANES), lambda c, i: (c, 0, 0)),
        compiler_params=pltpu.CompilerParams(
            dimension_semantics=("parallel", "arbitrary")),
    )(x2, t2)

    # Tiny final reduction + mean in the wrapper (lane-dense partials).
    return jnp.sum(partials) / jnp.float32(n)


def _focal_loss_ref(logits, targets):
    x = logits.astype(jnp.float32)
    t = targets.astype(jnp.float32)
    bce = jnp.maximum(x, 0.0) - x * t + jnp.log1p(jnp.exp(-jnp.abs(x)))
    probs = jax.nn.sigmoid(x)
    p_t = probs * t + (1.0 - probs) * (1.0 - t)
    alpha_t = ALPHA * t + (1.0 - ALPHA) * (1.0 - t)
    focal = alpha_t * (1.0 - p_t) ** GAMMA * bce
    return jnp.mean(focal)


if __name__ == "__main__":
    key = jax.random.PRNGKey(0)
    k1, k2 = jax.random.split(key)
    # Small segmentation-style shape (NCHW).
    shape = (2, 4, 16, 16)
    logits = jax.random.normal(k1, shape, dtype=jnp.float32) * 2.0
    targets = (jax.random.uniform(k2, shape) > 0.5).astype(jnp.float32)

    loss = jax.block_until_ready(focal_loss(logits, targets))
    ref = _focal_loss_ref(logits, targets)
    assert jnp.allclose(loss, ref, rtol=1e-4, atol=1e-6), (loss, ref)
    print("KERNEL_OK")
</pallas_src>

<mosaic_0001>
module attributes {stable_mosaic.version = 11 : i64} {
  func.func @_focal_loss_kernel(%arg0: i32, %arg1: i32, %arg2: memref<16x128xf32, #tpu.memory_space<vmem>>, %arg3: memref<16x128xf32, #tpu.memory_space<vmem>>, %arg4: memref<1x16x128xf32, #tpu.memory_space<vmem>>) attributes {dimension_semantics = [#tpu.dimension_semantics<parallel>, #tpu.dimension_semantics<arbitrary>], iteration_bounds = array<i64: 1, 1>, scalar_prefetch = 0 : i64, scratch_operands = 0 : i64, tpu.core_type = #tpu.core_type<tc>, window_params = [{transform_indices = @transform_0, window_bounds = array<i64: 16, 128>}, {transform_indices = @transform_1, window_bounds = array<i64: 16, 128>}, {transform_indices = @transform_2, window_bounds = array<i64: 1, 16, 128>}]} {
    %c0_i32 = arith.constant 0 : i32
    %0 = arith.cmpi eq, %arg1, %c0_i32 : i32
    %1 = arith.extui %0 : i1 to i32
    %c0_i32_0 = arith.constant 0 : i32
    %2 = arith.cmpi ne, %1, %c0_i32_0 : i32
    scf.if %2 {
      %cst_19 = arith.constant 0.000000e+00 : f32
      %47 = vector.broadcast %cst_19 : f32 to vector<16x128xf32>
      %c0_20 = arith.constant 0 : index
      %c0_21 = arith.constant 0 : index
      %c0_22 = arith.constant 0 : index
      %48 = vector.load %arg4[%c0_20, %c0_21, %c0_22] : memref<1x16x128xf32, #tpu.memory_space<vmem>>, vector<1x16x128xf32>
      %49 = vector.shape_cast %48 : vector<1x16x128xf32> to vector<16x128xf32>
      %50 = vector.shape_cast %47 : vector<16x128xf32> to vector<1x16x128xf32>
      tpu.vector_store %arg4[%c0_20, %c0_21, %c0_22], %50 {strides = array<i32>} : memref<1x16x128xf32, #tpu.memory_space<vmem>>, vector<1x16x128xf32>,
    } else {
    }
    %c0 = arith.constant 0 : index
    %c0_1 = arith.constant 0 : index
    %3 = vector.load %arg2[%c0, %c0_1] : memref<16x128xf32, #tpu.memory_space<vmem>>, vector<16x128xf32>
    %c0_2 = arith.constant 0 : index
    %c0_3 = arith.constant 0 : index
    %4 = vector.load %arg3[%c0_2, %c0_3] : memref<16x128xf32, #tpu.memory_space<vmem>>, vector<16x128xf32>
    %5 = math.absf %3 : vector<16x128xf32>
    %cst = arith.constant 0.000000e+00 : f32
    %6 = vector.broadcast %cst : f32 to vector<16x128xf32>
    %7 = arith.subf %6, %5 : vector<16x128xf32>
    %8 = math.exp %7 : vector<16x128xf32>
    %cst_4 = arith.constant 0.000000e+00 : f32
    %9 = vector.broadcast %cst_4 : f32 to vector<16x128xf32>
    %10 = arith.maximumf %3, %9 : vector<16x128xf32>
    %11 = arith.mulf %3, %4 : vector<16x128xf32>
    %12 = arith.subf %10, %11 : vector<16x128xf32>
    %13 = math.log1p %8 : vector<16x128xf32>
    %14 = arith.addf %12, %13 : vector<16x128xf32>
    %cst_5 = arith.constant 1.000000e+00 : f32
    %15 = vector.broadcast %cst_5 : f32 to vector<16x128xf32>
    %16 = arith.addf %15, %8 : vector<16x128xf32>
    %17 = tpu.reciprocal %16 : vector<16x128xf32> -> vector<16x128xf32>
    %cst_6 = arith.constant 0.000000e+00 : f32
    %18 = vector.broadcast %cst_6 : f32 to vector<16x128xf32>
    %19 = arith.cmpf oge, %3, %18 : vector<16x128xf32>
    %20 = arith.mulf %8, %17 : vector<16x128xf32>
    %21 = arith.select %19, %17, %20 : vector<16x128xi1>, vector<16x128xf32>
    %22 = arith.mulf %21, %4 : vector<16x128xf32>
    %cst_7 = arith.constant 1.000000e+00 : f32
    %23 = vector.broadcast %cst_7 : f32 to vector<16x128xf32>
    %24 = arith.subf %23, %21 : vector<16x128xf32>
    %cst_8 = arith.constant 1.000000e+00 : f32
    %25 = vector.broadcast %cst_8 : f32 to vector<16x128xf32>
    %26 = arith.subf %25, %4 : vector<16x128xf32>
    %27 = arith.mulf %24, %26 : vector<16x128xf32>
    %28 = arith.addf %22, %27 : vector<16x128xf32>
    %cst_9 = arith.constant 2.500000e-01 : f32
    %29 = vector.broadcast %cst_9 : f32 to vector<16x128xf32>
    %30 = arith.mulf %29, %4 : vector<16x128xf32>
    %cst_10 = arith.constant 1.000000e+00 : f32
    %31 = vector.broadcast %cst_10 : f32 to vector<16x128xf32>
    %32 = arith.subf %31, %4 : vector<16x128xf32>
    %cst_11 = arith.constant 7.500000e-01 : f32
    %33 = vector.broadcast %cst_11 : f32 to vector<16x128xf32>
    %34 = arith.mulf %33, %32 : vector<16x128xf32>
    %35 = arith.addf %30, %34 : vector<16x128xf32>
    %cst_12 = arith.constant 1.000000e+00 : f32
    %36 = vector.broadcast %cst_12 : f32 to vector<16x128xf32>
    %37 = arith.subf %36, %28 : vector<16x128xf32>
    %38 = arith.mulf %37, %37 : vector<16x128xf32>
    %39 = arith.mulf %35, %38 : vector<16x128xf32>
    %40 = arith.mulf %39, %14 : vector<16x128xf32>
    %c0_13 = arith.constant 0 : index
    %c0_14 = arith.constant 0 : index
    %c0_15 = arith.constant 0 : index
    %41 = vector.load %arg4[%c0_13, %c0_14, %c0_15] : memref<1x16x128xf32, #tpu.memory_space<vmem>>, vector<1x16x128xf32>
    %42 = vector.shape_cast %41 : vector<1x16x128xf32> to vector<16x128xf32>
    %43 = arith.addf %42, %40 : vector<16x128xf32>
    %c0_16 = arith.constant 0 : index
    %c0_17 = arith.constant 0 : index
    %c0_18 = arith.constant 0 : index
    %44 = vector.load %arg4[%c0_16, %c0_17, %c0_18] : memref<1x16x128xf32, #tpu.memory_space<vmem>>, vector<1x16x128xf32>
    %45 = vector.shape_cast %44 : vector<1x16x128xf32> to vector<16x128xf32>
    %46 = vector.shape_cast %43 : vector<16x128xf32> to vector<1x16x128xf32>
    tpu.vector_store %arg4[%c0_16, %c0_17, %c0_18], %46 {strides = array<i32>} : memref<1x16x128xf32, #tpu.memory_space<vmem>>, vector<1x16x128xf32>,
    return
  }
  func.func @transform_0(%arg0: i32, %arg1: i32) -> (i32, i32) {
    %c1_i32 = arith.constant 1 : i32
    %0 = arith.muli %arg0, %c1_i32 : i32
    %1 = arith.addi %0, %arg1 : i32
    %c0_i32 = arith.constant 0 : i32
    %c0_i32_0 = arith.constant 0 : i32
    return %1, %c0_i32 : i32, i32
  }
  func.func @transform_1(%arg0: i32, %arg1: i32) -> (i32, i32) {
    %c1_i32 = arith.constant 1 : i32
    %0 = arith.muli %arg0, %c1_i32 : i32
    %1 = arith.addi %0, %arg1 : i32
    %c0_i32 = arith.constant 0 : i32
    %c0_i32_0 = arith.constant 0 : i32
    return %1, %c0_i32 : i32, i32
  }
  func.func @transform_2(%arg0: i32, %arg1: i32) -> (i32, i32, i32) {
    %c0_i32 = arith.constant 0 : i32
    %c0_i32_0 = arith.constant 0 : i32
    %c0_i32_1 = arith.constant 0 : i32
    return %arg0, %c0_i32, %c0_i32_0 : i32, i32, i32
  }
}

</mosaic_0001>

<bundles_post_ra>
// kernel: focal_loss.1
= control target key start
LH: loop header
LB: loop body
LE: loop exit
PB: predicated region body
PF: predicated region fallthrough
CT: control target
= control target key end

     0   :  { %s213_s0 = inlined_call_operand.vmem [shape: f32[16,128], index: 0, kind: input, shape index: {}]   ;;  %s214_s1 = inlined_call_operand.vmem [shape: f32[16,128], index: 1, kind: input, shape index: {}]   ;;  %s215_s2 = inlined_call_operand.vmem [shape: f32[1,16,128], index: 2, kind: output, shape index: {}]  }
   0x1   :  { %v61_v0 = vld [vmem:[%s213_s0] sm:$0xff]  ;;  %v189_v1 = vld [vmem:[%s213_s0 + $0x8] sm:$0xff] }
   0x2   :  { %v65_v2 = vand.u32 2147483647, %v61_v0  ;;  %v66_v3 = vand.u32 2147483647, %v189_v1  ;;  %v63_v13 = vld [vmem:[%s214_s1] sm:$0xff]  ;;  %v73_v16 = vmax.f32 %v61_v0, 0.0 }
   0x3   :  { %vm103_vm0 = vcmp.ge.f32.partialorder %v61_v0, 0.0  ;;  %v75_v18 = vmul.f32 %v63_v13, %v61_v0  ;;  %v113_v21 = vsub.f32 1.0, %v63_v13  ;;  %v64_v22 = vld [vmem:[%s214_s1 + $0x8] sm:$0xff]  ;;  %v119_v25 = vmul.f32 0.25, %v63_v13 }
   0x4   :  { %v67_v4 = vsub.f32 0.0, %v65_v2  ;;  %v68_v5 = vsub.f32 0.0, %v66_v3  ;;  %v74_v26 = vmax.f32 %v189_v1, 0.0  ;;  %vm104_vm1 = vcmp.ge.f32.partialorder %v189_v1, 0.0 }
   0x5   :  { %v76_v28 = vmul.f32 %v64_v22, %v189_v1  ;;  %v114_v35 = vsub.f32 1.0, %v64_v22  ;;  %v121_v38 = vmul.f32 0.75, %v113_v21  ;;  %v77_v44 = vsub.f32 %v73_v16, %v75_v18 }
   0x6   :  { %v69_v6 = vmul.f32 1.442695, %v67_v4  ;;  %v71_v7 = vmul.f32 1.442695, %v68_v5  ;;  %v120_v47 = vmul.f32 0.25, %v64_v22 }
   0x7   :  { %v122_v50 = vmul.f32 0.75, %v114_v35  ;;  %v123_v52 = vadd.f32 %v121_v38, %v119_v25  ;;  %v78_v54 = vsub.f32 %v74_v26, %v76_v28 }
   0x8   :  { %156 = vpow2.f32 %v69_v6 }
   0x9   :  { %158 = vpow2.f32 %v71_v7  ;;  %v124_v59 = vadd.f32 %v122_v50, %v120_v47 }
  0x15   :  { %v157_v8 = vpop.eup %156 }
  0x16   :  { %v159_v9 = vpop.eup %158  ;;  %v79_v10 = vadd.f32 1.0, %v157_v8  ;;  %v82_v12 = vmul.f32 -0.5, %v157_v8  ;;  %v85_v24 = vand.u32 2147483647, %v157_v8 }
  0x17   :  { %v88_v11 = vadd.f32 1.0, %v159_v9  ;;  %v91_v14 = vmul.f32 -0.5, %v159_v9  ;;  %v94_v34 = vand.u32 2147483647, %v159_v9 }
  0x18   :  { %160 = vrcp.f32 %v79_v10  ;;  %v83_v19 = vadd.f32 1.0, %v82_v12  ;;  %vm201_vm2 = vcmp.lt.f32.partialorder %v85_v24, 0.0004427343 }
  0x19   :  { %162 = vlog2.f32 %v79_v10  ;;  %v92_v29 = vadd.f32 1.0, %v91_v14  ;;  %vm95_vm3 = vcmp.lt.f32.partialorder %v94_v34, 0.0004427343 }
  0x1a   :  { %164 = vrcp.f32 %v88_v11  ;;  %v84_v37 = vmul.f32 %v157_v8, %v83_v19 }
  0x1b   :  { %166 = vlog2.f32 %v88_v11  ;;  %v93_v46 = vmul.f32 %v159_v9, %v92_v29 }
  0x25   :  { %v161_v15 = vpop.eup %160 }
  0x26   :  { %v163_v17 = vpop.eup %162  ;;  %v105_v20 = vmul.f32 %v161_v15, %v157_v8 }
  0x27   :  { %v165_v23 = vpop.eup %164  ;;  %v81_v36 = vmul.f32 0.6931472, %v163_v17 }
  0x28   :  { %v107_v27 = vsel %vm103_vm0, %v161_v15, %v105_v20  ;;  %v106_v30 = vmul.f32 %v165_v23, %v159_v9  ;;  %v167_v31 = vpop.eup %166 }
  0x29   :  { %v109_v32 = vmul.f32 %v107_v27, %v63_v13  ;;  %v111_v33 = vsub.f32 1.0, %v107_v27  ;;  %v90_v45 = vmul.f32 0.6931472, %v167_v31  ;;  %v87_v51 = vsel %vm201_vm2, %v84_v37, %v81_v36 }
  0x2a   :  { %v108_v39 = vsel %vm104_vm1, %v165_v23, %v106_v30  ;;  %v97_v57 = vadd.f32 %v87_v51, %v77_v44 }
  0x2b   :  { %v115_v41 = vmul.f32 %v113_v21, %v111_v33  ;;  %v110_v42 = vmul.f32 %v108_v39, %v64_v22  ;;  %v112_v43 = vsub.f32 1.0, %v108_v39  ;;  %v96_v56 = vsel %vm95_vm3, %v93_v46, %v90_v45 }
  0x2c   :  { %v98_v62 = vadd.f32 %v96_v56, %v78_v54 }
  0x2d   :  { %v117_v48 = vadd.f32 %v115_v41, %v109_v32  ;;  %v116_v49 = vmul.f32 %v114_v35, %v112_v43 }
  0x2f   :  { %v125_v53 = vsub.f32 1.0, %v117_v48  ;;  %v118_v55 = vadd.f32 %v116_v49, %v110_v42 }
  0x31   :  { %v127_v58 = vmul.f32 %v125_v53, %v125_v53  ;;  %v126_v60 = vsub.f32 1.0, %v118_v55 }
  0x33   :  { %v129_v61 = vmul.f32 %v127_v58, %v123_v52  ;;  %v128_v63 = vmul.f32 %v126_v60, %v126_v60 }
  0x35   :  { %v131_v0 = vmul.f32 %v129_v61, %v97_v57  ;;  %v130_v1 = vmul.f32 %v128_v63, %v124_v59 }
  0x37   :  { %v132_v2 = vmul.f32 %v130_v1, %v98_v62  ;;  %137 = vst [vmem:[%s215_s2] sm:$0xff] %v131_v0 }
  0x39   :  { %138 = vst [vmem:[%s215_s2 + $0x8] sm:$0xff] %v132_v2 }

</bundles_post_ra>
